<compile_context>
chip_gen: v7x
topology: tpu7x:2x2x1
jax: 0.10.0
libtpu: 0.0.40
codegen_flags: <defaults>
</compile_context>

<pallas_src>
import functools
import math

import jax
import jax.numpy as jnp
from jax import lax
from jax.experimental import pallas as pl
from jax.experimental.pallas import tpu as pltpu


# ----------------------------------------------------------------------------
# chip-aware scoped-VMEM budget (big on v5e/v6e, capped on v7x)
# ----------------------------------------------------------------------------

_VMEM_LIMIT = None


def _get_vmem_limit():
    global _VMEM_LIMIT
    if _VMEM_LIMIT is None:
        phys = 128 * 1024 * 1024
        try:
            info = pltpu.get_tpu_info()
            phys = int(getattr(info, "vmem_capacity_bytes", phys))
        except Exception:
            pass
        # ~3/4 of physical VMEM, never above 96 MiB:
        #   v5e/v6e (128 MiB) -> 96 MiB ; v7x (64 MiB) -> 48 MiB
        _VMEM_LIMIT = min((phys * 3) // 4, 96 * 1024 * 1024)
    return _VMEM_LIMIT


def _pick_tile(dim, target, align=1):
    """Largest divisor of `dim` that is <= target (prefer `align`-multiples)."""
    if dim <= target:
        return dim
    best = None
    for t in range(target, 0, -1):
        if dim % t == 0:
            if t % align == 0:
                return t
            if best is None:
                best = t
    return best if best is not None else dim


def _fit_tile(dim, target, est_bytes, budget, align=8):
    """Pick a divisor tile <= target whose estimated VMEM use fits `budget`."""
    t = target
    while True:
        tile = _pick_tile(dim, t, align=align)
        if est_bytes(tile) <= budget or tile <= align:
            return tile
        t = max(align, tile // 2)


# ----------------------------------------------------------------------------
# 1) weight pruning: w_bf16 = (w * mask).astype(bf16), tiled, once per forward
# ----------------------------------------------------------------------------

def _premask_kernel(w_ref, m_ref, o_ref):
    o_ref[...] = (w_ref[...] * m_ref[...]).astype(o_ref.dtype)


def premask_weight(w, m, tk_t=1024, tn_t=1024):
    K, N = w.shape
    tk = _pick_tile(K, tk_t, align=8)
    tn = _pick_tile(N, tn_t, align=128)
    spec = pl.BlockSpec((tk, tn), lambda i, j: (i, j))
    return pl.pallas_call(
        _premask_kernel,
        out_shape=jax.ShapeDtypeStruct((K, N), jnp.bfloat16),
        grid=(K // tk, N // tn),
        in_specs=[spec, spec],
        out_specs=spec,
        compiler_params=pltpu.CompilerParams(
            dimension_semantics=("parallel", "parallel"),
            vmem_limit_bytes=_get_vmem_limit()),
    )(w, m)


# ----------------------------------------------------------------------------
# 2) embeddings: masked token rows + masked position rows (no [M,H] broadcast
#    of the position table; its rows are index-mapped from [S,H] directly)
# ----------------------------------------------------------------------------

def _embed_kernel(tw_ref, tm_ref, pw_ref, pm_ref, o_ref):
    # tw/tm/o blocks are (1, ts, H); pw/pm blocks are (ts, H) -> broadcast add
    o_ref[...] = tw_ref[...] * tm_ref[...] + pw_ref[...] * pm_ref[...]


def embed_add(tok_w, tok_m, pos_w, pos_m, ts_t=512):
    B, S, H = tok_w.shape
    ts = _pick_tile(S, ts_t, align=8)
    tok_spec = pl.BlockSpec((1, ts, H), lambda b, j: (b, j, 0))
    pos_spec = pl.BlockSpec((ts, H), lambda b, j: (j, 0))
    return pl.pallas_call(
        _embed_kernel,
        out_shape=jax.ShapeDtypeStruct((B, S, H), jnp.float32),
        grid=(B, S // ts),
        in_specs=[tok_spec, tok_spec, pos_spec, pos_spec],
        out_specs=tok_spec,
        compiler_params=pltpu.CompilerParams(
            dimension_semantics=("parallel", "parallel"),
            vmem_limit_bytes=_get_vmem_limit()),
    )(tok_w, tok_m, pos_w, pos_m)


# ----------------------------------------------------------------------------
# 3) fused LayerNorm (masked gain) + matmul (+ optional gelu_new) -> bf16
#    grid = (M//tm,); the bf16 premasked weight is a FULL (K,N) block with a
#    constant index_map -> VMEM-resident across all M tiles (no re-streaming).
# ----------------------------------------------------------------------------

def _ln_linear_kernel(x_ref, g_ref, gm_ref, bln_ref, w_ref, b_ref, o_ref,
                      *, eps, activation):
    x = x_ref[...]                                   # f32 residual stream
    g = g_ref[...] * gm_ref[...]                     # masked LN gain
    mu = jnp.mean(x, axis=-1, keepdims=True)
    var = jnp.mean((x - mu) * (x - mu), axis=-1, keepdims=True)
    xn = ((x - mu) * lax.rsqrt(var + eps) * g + bln_ref[...]).astype(jnp.bfloat16)

    y = jnp.dot(xn, w_ref[...], preferred_element_type=jnp.float32) + b_ref[...]
    if activation == "gelu_new":                     # f32 epilogue (v5e ok)
        c = math.sqrt(2.0 / math.pi)
        y = 0.5 * y * (1.0 + jnp.tanh(c * (y + 0.044715 * y * y * y)))
    o_ref[...] = y.astype(o_ref.dtype)


def ln_linear(x, g, gm, bln, w, b, activation=None, eps=1e-5, tm_t=512):
    M, K = x.shape
    _, N = w.shape
    budget = _get_vmem_limit()

    def est(tm):                       # rough double-buffered VMEM footprint
        return (2 * tm * K * 4         # x f32
                + 2 * K * N * 2        # resident bf16 weight
                + 2 * tm * N * 2       # bf16 output
                + tm * N * 4           # in-kernel f32 matmul result
                + 2 * (3 * K + N) * 4)
    tm = _fit_tile(M, tm_t, est, budget)

    return pl.pallas_call(
        functools.partial(_ln_linear_kernel, eps=eps, activation=activation),
        out_shape=jax.ShapeDtypeStruct((M, N), jnp.bfloat16),
        grid=(M // tm,),
        in_specs=[
            pl.BlockSpec((tm, K), lambda i: (i, 0)),   # x (f32)
            pl.BlockSpec((1, K), lambda i: (0, 0)),    # LN gamma
            pl.BlockSpec((1, K), lambda i: (0, 0)),    # LN gamma mask
            pl.BlockSpec((1, K), lambda i: (0, 0)),    # LN beta
            pl.BlockSpec((K, N), lambda i: (0, 0)),    # W bf16, VMEM-resident
            pl.BlockSpec((1, N), lambda i: (0, 0)),    # bias
        ],
        out_specs=pl.BlockSpec((tm, N), lambda i: (i, 0)),
        compiler_params=pltpu.CompilerParams(
            dimension_semantics=("parallel",),
            vmem_limit_bytes=budget),
    )(x, g.reshape(1, K), gm.reshape(1, K), bln.reshape(1, K),
      w, b.reshape(1, N))


# ----------------------------------------------------------------------------
# 4) matmul + bias + fused residual add; full-K single dot, weight resident
# ----------------------------------------------------------------------------

def _linear_res_kernel(x_ref, w_ref, b_ref, r_ref, o_ref):
    y = jnp.dot(x_ref[...], w_ref[...], preferred_element_type=jnp.float32)
    o_ref[...] = (y + b_ref[...] + r_ref[...]).astype(o_ref.dtype)


def linear_residual(x, w, b, res, tm_t=512):
    M, K = x.shape
    _, N = w.shape
    budget = _get_vmem_limit()

    def est(tm):
        return (2 * tm * K * 2         # x bf16
                + 2 * K * N * 2        # resident bf16 weight
                + 2 * tm * N * 4       # residual f32
                + 2 * tm * N * 4       # output f32
                + tm * N * 4 + 2 * N * 4)
    tm = _fit_tile(M, tm_t, est, budget)

    return pl.pallas_call(
        _linear_res_kernel,
        out_shape=jax.ShapeDtypeStruct((M, N), jnp.float32),
        grid=(M // tm,),
        in_specs=[
            pl.BlockSpec((tm, K), lambda i: (i, 0)),   # x (bf16)
            pl.BlockSpec((K, N), lambda i: (0, 0)),    # W bf16, VMEM-resident
            pl.BlockSpec((1, N), lambda i: (0, 0)),    # bias
            pl.BlockSpec((tm, N), lambda i: (i, 0)),   # residual (f32)
        ],
        out_specs=pl.BlockSpec((tm, N), lambda i: (i, 0)),
        compiler_params=pltpu.CompilerParams(
            dimension_semantics=("parallel",),
            vmem_limit_bytes=budget),
    )(x, w, b.reshape(1, N), res)


# ----------------------------------------------------------------------------
# 5) causal attention, flash-style: grid = (B*n_head, S//tq, S//tk),
#    online softmax in VMEM scratch, per-tile causal iota, tiles strictly
#    above the diagonal skipped, mask-free branch for fully-causal tiles.
# ----------------------------------------------------------------------------

def _flash_attn_kernel(q_ref, k_ref, v_ref, o_ref, m_sc, l_sc, acc_sc,
                       *, scale, tq, tk):
    qi = pl.program_id(1)
    ki = pl.program_id(2)

    @pl.when(ki == 0)
    def _():
        m_sc[...] = jnp.full_like(m_sc, -jnp.inf)
        l_sc[...] = jnp.zeros_like(l_sc)
        acc_sc[...] = jnp.zeros_like(acc_sc)

    q_lo = qi * tq
    q_hi = q_lo + (tq - 1)
    k_lo = ki * tk
    k_hi = k_lo + (tk - 1)

    def update(masked):
        def _do():
            # fold 1/sqrt(hd) into q (hd mults instead of tk per row)
            q = (q_ref[0].astype(jnp.float32) * scale).astype(jnp.bfloat16)
            # contract last dims of q,k directly (no k.T relayout)
            s = lax.dot_general(q, k_ref[0], (((1,), (1,)), ((), ())),
                                preferred_element_type=jnp.float32)
            if masked:
                rows = q_lo + lax.broadcasted_iota(jnp.int32, (tq, tk), 0)
                cols = k_lo + lax.broadcasted_iota(jnp.int32, (tq, tk), 1)
                s = jnp.where(cols <= rows, s, jnp.float32(-1e30))
            m_prev = m_sc[...]
            m_new = jnp.maximum(m_prev, jnp.max(s, axis=-1, keepdims=True))
            alpha = jnp.exp(m_prev - m_new)
            p = jnp.exp(s - m_new)
            l_sc[...] = alpha * l_sc[...] + jnp.sum(p, axis=-1, keepdims=True)
            acc_sc[...] = alpha * acc_sc[...] + jnp.dot(
                p.astype(v_ref.dtype), v_ref[0],
                preferred_element_type=jnp.float32)
            m_sc[...] = m_new
        return _do

    # tiles entirely at/below the diagonal: no masking needed
    pl.when(k_hi <= q_lo)(update(masked=False))
    # tiles straddling the diagonal: apply the per-tile causal mask
    pl.when(jnp.logical_and(k_hi > q_lo, k_lo <= q_hi))(update(masked=True))
    # tiles strictly above the diagonal (k_lo > q_hi): skipped entirely

    @pl.when(ki == pl.num_programs(2) - 1)
    def _():
        inv_l = pl.reciprocal(l_sc[...], approx=True)
        o_ref[0] = (acc_sc[...] * inv_l).astype(o_ref.dtype)


def causal_flash_attention(q, k, v, tq_t=256, tk_t=256):
    BH, S, hd = q.shape
    tq = _pick_tile(S, tq_t, align=8)
    tk = _pick_tile(S, tk_t, align=8)
    scale = 1.0 / math.sqrt(hd)
    q_spec = pl.BlockSpec((1, tq, hd), lambda b, qi, ki: (b, qi, 0))
    kv_spec = pl.BlockSpec((1, tk, hd), lambda b, qi, ki: (b, ki, 0))
    return pl.pallas_call(
        functools.partial(_flash_attn_kernel, scale=scale, tq=tq, tk=tk),
        out_shape=jax.ShapeDtypeStruct((BH, S, hd), jnp.bfloat16),
        grid=(BH, S // tq, S // tk),
        in_specs=[q_spec, kv_spec, kv_spec],
        out_specs=q_spec,
        scratch_shapes=[pltpu.VMEM((tq, 1), jnp.float32),
                        pltpu.VMEM((tq, 1), jnp.float32),
                        pltpu.VMEM((tq, hd), jnp.float32)],
        compiler_params=pltpu.CompilerParams(
            dimension_semantics=("parallel", "parallel", "arbitrary"),
            vmem_limit_bytes=_get_vmem_limit()),
    )(q, k, v)


# ----------------------------------------------------------------------------
# 6) final LayerNorm (masked gain), tiled over M
# ----------------------------------------------------------------------------

def _layernorm_kernel(x_ref, g_ref, gm_ref, b_ref, o_ref, *, eps):
    x = x_ref[...]
    g = g_ref[...] * gm_ref[...]
    mu = jnp.mean(x, axis=-1, keepdims=True)
    var = jnp.mean((x - mu) * (x - mu), axis=-1, keepdims=True)
    o_ref[...] = (x - mu) * lax.rsqrt(var + eps) * g + b_ref[...]


def layernorm(x, g, gm, b, eps=1e-5, tm_t=1024):
    M, H = x.shape
    tm = _pick_tile(M, tm_t, align=8)
    row = pl.BlockSpec((1, H), lambda i: (0, 0))
    return pl.pallas_call(
        functools.partial(_layernorm_kernel, eps=eps),
        out_shape=jax.ShapeDtypeStruct((M, H), jnp.float32),
        grid=(M // tm,),
        in_specs=[pl.BlockSpec((tm, H), lambda i: (i, 0)), row, row, row],
        out_specs=pl.BlockSpec((tm, H), lambda i: (i, 0)),
        compiler_params=pltpu.CompilerParams(
            dimension_semantics=("parallel",),
            vmem_limit_bytes=_get_vmem_limit()),
    )(x, g.reshape(1, H), gm.reshape(1, H), b.reshape(1, H))


# ----------------------------------------------------------------------------
# Synthetic GPT-2-style parameters + ones-masks (PrunedGPT2Model.__init__)
# ----------------------------------------------------------------------------
# TODO(synk): real 'gpt2-medium' pretrained weights cannot be loaded here;
# parameters are initialized deterministically in-script instead.

def init_gpt2_params(key, cfg):
    V, P, H, L = cfg["vocab"], cfg["n_pos"], cfg["n_embd"], cfg["n_layer"]
    F = cfg["n_inner"]
    keys = jax.random.split(key, 2 + 4 * L)
    p = {
        "wte": 0.02 * jax.random.normal(keys[0], (V, H), jnp.float32),
        "wpe": 0.01 * jax.random.normal(keys[1], (P, H), jnp.float32),
        "ln_f_w": jnp.ones((H,), jnp.float32),
        "ln_f_b": jnp.zeros((H,), jnp.float32),
        "blocks": [],
    }
    for l in range(L):
        k0, k1, k2, k3 = keys[2 + 4 * l: 6 + 4 * l]
        p["blocks"].append({
            "ln_1_w": jnp.ones((H,), jnp.float32),
            "ln_1_b": jnp.zeros((H,), jnp.float32),
            "c_attn_w": 0.02 * jax.random.normal(k0, (H, 3 * H), jnp.float32),
            "c_attn_b": jnp.zeros((3 * H,), jnp.float32),
            "attn_proj_w": 0.02 * jax.random.normal(k1, (H, H), jnp.float32),
            "attn_proj_b": jnp.zeros((H,), jnp.float32),
            "ln_2_w": jnp.ones((H,), jnp.float32),
            "ln_2_b": jnp.zeros((H,), jnp.float32),
            "c_fc_w": 0.02 * jax.random.normal(k2, (H, F), jnp.float32),
            "c_fc_b": jnp.zeros((F,), jnp.float32),
            "c_proj_w": 0.02 * jax.random.normal(k3, (F, H), jnp.float32),
            "c_proj_b": jnp.zeros((H,), jnp.float32),
        })
    return p


def init_masks(params):
    # nn.Parameter(torch.ones_like(param)) for every 'weight' parameter
    weight_names = ("wte", "wpe", "ln_f_w")
    blk_weight_names = ("ln_1_w", "c_attn_w", "attn_proj_w",
                        "ln_2_w", "c_fc_w", "c_proj_w")
    masks = {n: jnp.ones_like(params[n]) for n in weight_names}
    masks["blocks"] = [{n: jnp.ones_like(b[n]) for n in blk_weight_names}
                       for b in params["blocks"]]
    return masks


# ----------------------------------------------------------------------------
# Forward pass (PrunedGPT2Model.forward -> GPT2Model last_hidden_state)
# ----------------------------------------------------------------------------

def pruned_gpt2_forward(params, masks, input_ids, cfg):
    B, S = input_ids.shape
    H = cfg["n_embd"]
    n_head = cfg["n_head"]
    hd = H // n_head
    M = B * S

    # ---- mask every big matmul weight ONCE (tiled, bf16 out) ----
    masked_w = []
    for blk, mblk in zip(params["blocks"], masks["blocks"]):
        masked_w.append({
            "c_attn_w": premask_weight(blk["c_attn_w"], mblk["c_attn_w"]),
            "attn_proj_w": premask_weight(blk["attn_proj_w"],
                                          mblk["attn_proj_w"]),
            "c_fc_w": premask_weight(blk["c_fc_w"], mblk["c_fc_w"]),
            "c_proj_w": premask_weight(blk["c_proj_w"], mblk["c_proj_w"]),
        })

    # ---- embeddings: gather token rows (XLA gather), mask only those rows;
    #      position rows/masks stay [S,H] and are tiled inside the kernel ----
    # TODO(synk): fuse the token-id gather into the embed kernel (scalar
    # prefetch + Element row indexing) to avoid the [M,H] gather round-trip.
    tok_w = params["wte"][input_ids]                      # [B, S, H]
    tok_m = masks["wte"][input_ids]
    pos_w = params["wpe"][:S]                             # [S, H]
    pos_m = masks["wpe"][:S]
    h = embed_add(tok_w, tok_m, pos_w, pos_m).reshape(M, H)   # [M, H] f32

    for blk, mblk, mw in zip(params["blocks"], masks["blocks"], masked_w):
        # --- attention sub-block: LN fused into qkv matmul ---
        qkv = ln_linear(h, blk["ln_1_w"], mblk["ln_1_w"], blk["ln_1_b"],
                        mw["c_attn_w"], blk["c_attn_b"])        # [M, 3H] bf16

        # head-major split (one XLA transpose pass; blocks then keep the full
        # head_dim as their lane dimension inside the flash kernel)
        qkv_h = qkv.reshape(B, S, 3, n_head, hd).transpose(2, 0, 3, 1, 4)
        q = qkv_h[0].reshape(B * n_head, S, hd)
        k = qkv_h[1].reshape(B * n_head, S, hd)
        v = qkv_h[2].reshape(B * n_head, S, hd)
        ctx = causal_flash_attention(q, k, v)                   # [BH, S, hd]
        ctx = (ctx.reshape(B, n_head, S, hd)
                  .transpose(0, 2, 1, 3).reshape(M, H))         # [M, H] bf16

        h = linear_residual(ctx, mw["attn_proj_w"],
                            blk["attn_proj_b"], h)              # [M, H] f32

        # --- MLP sub-block: LN fused into c_fc matmul, residual fused into
        #     c_proj matmul ---
        ff = ln_linear(h, blk["ln_2_w"], mblk["ln_2_w"], blk["ln_2_b"],
                       mw["c_fc_w"], blk["c_fc_b"],
                       activation="gelu_new")                   # [M, F] bf16
        h = linear_residual(ff, mw["c_proj_w"], blk["c_proj_b"], h)

    h = layernorm(h, params["ln_f_w"], masks["ln_f_w"], params["ln_f_b"])
    return h.reshape(B, S, H)                                   # [B, S, H]


# ----------------------------------------------------------------------------
if __name__ == "__main__":
    cfg = dict(vocab=64, n_pos=16, n_embd=32, n_head=4, n_layer=2, n_inner=128)

    key = jax.random.PRNGKey(0)
    k_param, k_ids = jax.random.split(key)
    params = init_gpt2_params(k_param, cfg)
    masks = init_masks(params)

    B, S = 2, 8
    input_ids = jax.random.randint(k_ids, (B, S), 0, cfg["vocab"],
                                   dtype=jnp.int32)

    out = pruned_gpt2_forward(params, masks, input_ids, cfg)
    out = jax.block_until_ready(out)
    assert out.shape == (B, S, cfg["n_embd"])
    assert jnp.all(jnp.isfinite(out))
    print("KERNEL_OK")
</pallas_src>

<mosaic_0001>
module attributes {stable_mosaic.version = 11 : i64} {
  func.func @_premask_kernel(%arg0: i32, %arg1: i32, %arg2: memref<32x96xf32, #tpu.memory_space<vmem>>, %arg3: memref<32x96xf32, #tpu.memory_space<vmem>>, %arg4: memref<32x96xbf16, #tpu.memory_space<vmem>>) attributes {dimension_semantics = [#tpu.dimension_semantics<parallel>, #tpu.dimension_semantics<parallel>], iteration_bounds = array<i64: 1, 1>, scalar_prefetch = 0 : i64, scratch_operands = 0 : i64, tpu.core_type = #tpu.core_type<tc>, window_params = [{transform_indices = @transform_0, window_bounds = array<i64: 32, 96>}, {transform_indices = @transform_1, window_bounds = array<i64: 32, 96>}, {transform_indices = @transform_2, window_bounds = array<i64: 32, 96>}]} {
    %c0 = arith.constant 0 : index
    %c0_0 = arith.constant 0 : index
    %0 = vector.load %arg2[%c0, %c0_0] : memref<32x96xf32, #tpu.memory_space<vmem>>, vector<32x96xf32>
    %c0_1 = arith.constant 0 : index
    %c0_2 = arith.constant 0 : index
    %1 = vector.load %arg3[%c0_1, %c0_2] : memref<32x96xf32, #tpu.memory_space<vmem>>, vector<32x96xf32>
    %2 = arith.mulf %0, %1 : vector<32x96xf32>
    %3 = arith.truncf %2 : vector<32x96xf32> to vector<32x96xbf16>
    %c0_3 = arith.constant 0 : index
    %c0_4 = arith.constant 0 : index
    %4 = vector.load %arg4[%c0_3, %c0_4] : memref<32x96xbf16, #tpu.memory_space<vmem>>, vector<32x96xbf16>
    tpu.vector_store %arg4[%c0_3, %c0_4], %3 {strides = array<i32>} : memref<32x96xbf16, #tpu.memory_space<vmem>>, vector<32x96xbf16>,
    return
  }
  func.func @transform_0(%arg0: i32, %arg1: i32) -> (i32, i32) {
    %c0_i32 = arith.constant 0 : i32
    return %arg0, %arg1 : i32, i32
  }
  func.func @transform_1(%arg0: i32, %arg1: i32) -> (i32, i32) {
    %c0_i32 = arith.constant 0 : i32
    return %arg0, %arg1 : i32, i32
  }
  func.func @transform_2(%arg0: i32, %arg1: i32) -> (i32, i32) {
    %c0_i32 = arith.constant 0 : i32
    return %arg0, %arg1 : i32, i32
  }
}

</mosaic_0001>

<bundles_post_ra>
// kernel: tpu_custom_call.1
= control target key start
LH: loop header
LB: loop body
LE: loop exit
PB: predicated region body
PF: predicated region fallthrough
CT: control target
= control target key end

     0   :  { %7 = vsyncpa [#allocation3], 0  ;;  %s240_s0 = inlined_call_operand.hbm [shape: f32[32,96], index: 0, kind: input, shape index: {}]   ;;  %s241_s1 = inlined_call_operand.hbm [shape: f32[32,96], index: 1, kind: input, shape index: {}]   ;;  %s242_s2 = inlined_call_operand.hbm [shape: bf16[32,96], index: 2, kind: output, shape index: {}]  }
   0x1   :  { %8 = vsyncpa [#allocation6], 0 }
   0x2   :  { %9 = vsyncpa [#allocation4], 0  ;;  %s178_s9 = smov [#allocation2]   ;;  %s106_s13 = scalar_lea.hbm %s240_s0, 512 }
   0x3   :  { %s15_s10 = sshll.u32 %s178_s9, 4  ;;  %p107_p0 = scmp.ne.s32.totalorder %s240_s0, %s106_s13  ;;  %s16_s10 = int_to_ptr.vmem [resolvable:$true] %s15_s10 }
   0x4   :  { %p110_p1 = scmp.lt.u32.totalorder %s106_s13, %s240_s0 }
   0x6   :  { %p112_p2 = pnand %p110_p1, %p107_p0 }
   0x8   :  { %115 = shalt.err (!%p112_p2)
}
   0x9   :  { %s116_s18 = scalar_lea.vmem %s16_s10, 512  ;;  %p121_p4 = scmp.lt.s32.totalorder %s16_s10, %s16_s10 }
   0xa   :  { %p117_p3 = scmp.ne.s32.totalorder %s16_s10, %s116_s18  ;;  %p122_p5 = scmp.lt.s32.totalorder %s116_s18, %s116_s18 }
   0xc   :  { %p123_p6 = por %p122_p5, %p121_p4 }
   0xe   :  { %p124_p7 = pnand %p123_p6, %p117_p3 }
  0x10   :  { %127 = shalt.err (!%p124_p7)
}
  0x11   :  { %s179_s19 = smov 128   ;;  %s180_s20 = smov 8  }
  0x12   :  { %21 = dma.hbm_to_vmem [thread:$0]  %s240_s0, 512, %s16_s10, [#allocation3], %s179_s19, %s179_s19, %s180_s20  }
  0x13   :  { %s181_s23 = smov [#allocation5]   ;;  %s128_s27 = scalar_lea.hbm %s241_s1, 512 }
  0x14   :  { %s27_s24 = sshll.u32 %s181_s23, 4  ;;  %p129_p8 = scmp.ne.s32.totalorder %s241_s1, %s128_s27  ;;  %s28_s24 = int_to_ptr.vmem [resolvable:$true] %s27_s24 }
  0x15   :  { %p132_p9 = scmp.lt.u32.totalorder %s128_s27, %s241_s1 }
  0x17   :  { %p134_p10 = pnand %p132_p9, %p129_p8 }
  0x19   :  { %137 = shalt.err (!%p134_p10)
}
  0x1a   :  { %s138_s4 = scalar_lea.vmem %s28_s24, 512  ;;  %p143_p12 = scmp.lt.s32.totalorder %s28_s24, %s28_s24 }
  0x1b   :  { %p139_p11 = scmp.ne.s32.totalorder %s28_s24, %s138_s4  ;;  %p144_p13 = scmp.lt.s32.totalorder %s138_s4, %s138_s4 }
  0x1d   :  { %p145_p0 = por %p144_p13, %p143_p12 }
  0x1f   :  { %p146_p1 = pnand %p145_p0, %p139_p11 }
  0x21   :  { %149 = shalt.err (!%p146_p1)
}
  0x22   :  { %33 = dma.hbm_to_vmem [thread:$0]  %s241_s1, 512, %s28_s24, [#allocation6], %s179_s19, %s179_s19, %s180_s20  }
  0x23   :  { %172 = dma.done.wait [#allocation3], 512  }
  0x24   :  { %173 = vsyncadd [#allocation3], 4294966784 }
  0x25   :  { %174 = dma.done.wait [#allocation6], 512  }
  0x26   :  { %175 = vsyncadd [#allocation6], 4294966784  ;;  %v40_v0 = vld [vmem:[#allocation2] sm:$0xff]  ;;  %v41_v2 = vld [vmem:[#allocation2 + $0x8] sm:$0xff]  ;;  %vm68_vm0 = vcmask 781312   ;;  %s182_s6 = smov [#allocation7]  }
  0x27   :  { %v44_v1 = vld [vmem:[#allocation5] sm:$0xff]  ;;  %v45_v4 = vld [vmem:[#allocation5 + $0x8] sm:$0xff]  ;;  %v42_v5 = vld [vmem:[#allocation2 + $0x10] sm:$0xff]  ;;  %s78_s7 = sshll.u32 %s182_s6, 4  ;;  %s79_s7 = int_to_ptr.vmem [resolvable:$true] %s78_s7 }
  0x28   :  { %v48_v3 = vmul.f32 %v44_v1, %v40_v0  ;;  %v46_v6 = vld [vmem:[#allocation5 + $0x10] sm:$0xff]  ;;  %v49_v7 = vmul.f32 %v45_v4, %v41_v2  ;;  %v43_v9 = vld [vmem:[#allocation2 + $0x18] sm:$0xff]  ;;  %s150_s1 = scalar_lea.vmem %s79_s7, 256  ;;  %p155_p3 = scmp.lt.s32.totalorder %s79_s7, %s79_s7 }
  0x29   :  { %v50_v8 = vmul.f32 %v46_v6, %v42_v5  ;;  %v47_v10 = vld [vmem:[#allocation5 + $0x18] sm:$0xff]  ;;  %p151_p2 = scmp.ne.s32.totalorder %s79_s7, %s150_s1  ;;  %p156_p4 = scmp.lt.s32.totalorder %s150_s1, %s150_s1 }
  0x2a   :  { %v95_v11 = vpack.c.bf16 %v48_v3, %v48_v3  ;;  %v51_v12 = vmul.f32 %v47_v10, %v43_v9  ;;  %v96_v13 = vpack.c.bf16 %v49_v7, %v49_v7 }
  0x2b   :  { %v97_v14 = vpack.c.bf16 %v50_v8, %v50_v8  ;;  %p157_p5 = por %p156_p4, %p155_p3 }
  0x2c   :  { %69 = vst.msk [vmem:[#allocation7] sm:$0xf] %vm68_vm0, %v95_v11  ;;  %v98_v15 = vpack.c.bf16 %v51_v12, %v51_v12  ;;  %70 = vst.msk [vmem:[#allocation7 + $0x4] sm:$0xf] %vm68_vm0, %v96_v13 }
  0x2d   :  { %71 = vst.msk [vmem:[#allocation7 + $0x8] sm:$0xf] %vm68_vm0, %v97_v14  ;;  %p158_p6 = pnand %p157_p5, %p151_p2 }
  0x2e   :  { %72 = vst.msk [vmem:[#allocation7 + $0xc] sm:$0xf] %vm68_vm0, %v98_v15 }
  0x2f   :  { %161 = shalt.err (!%p158_p6)
}
  0x30   :  { %s162_s10 = scalar_lea.hbm %s242_s2, 256 }
  0x31   :  { %p163_p7 = scmp.ne.s32.totalorder %s242_s2, %s162_s10  ;;  %p166_p8 = scmp.lt.u32.totalorder %s162_s10, %s242_s2 }
  0x33   :  { %p168_p9 = pnand %p166_p8, %p163_p7 }
  0x35   :  { %171 = shalt.err (!%p168_p9)
}
  0x36   :  { %s183_s15 = smov 64   ;;  %s184_s16 = smov 4  }
  0x37   :  { %84 = dma.vmem_to_hbm [thread:$0]  %s79_s7, 256, %s242_s2, [#allocation4], %s183_s15, %s183_s15, %s184_s16  }
  0x38   :  { %176 = dma.done.wait [#allocation4], 256  }
  0x39   :  { %177 = vsyncadd [#allocation4], 4294967040 }
  0x3a   :  { %88 = vsyncpa [#allocation3], 1 }
  0x3b   :  { %89 = vsyncpa [#allocation6], 1 }
  0x3c   :  { %90 = vsyncpa [#allocation4], 1 }

</bundles_post_ra>
